<compile_context>
chip_gen: v7x
topology: tpu7x:2x2x1
jax: 0.10.0
libtpu: 0.0.40
codegen_flags: <defaults>
</compile_context>

<pallas_src>
import jax
import jax.numpy as jnp
from jax.experimental import pallas as pl
from jax.experimental.pallas import tpu as pltpu


# --------------------------------------------------------------------------- #
# Kernels (everything tiny lives in VMEM; pure MXU + one bias add)
# --------------------------------------------------------------------------- #
def _bicep_fused_kernel(paths_ref, x_ref, w_bicep_ref, w_res_ref, b_ref, out_ref):
    """Linear-residual case.

    paths_ref   : [Bt, P*S]      f32   (flattened Brownian paths)
    x_ref       : [Bt, D_in]     f32
    w_bicep_ref : [P*S, D_out]   f32   = alpha * (w_agg ⊗ w_out)
    w_res_ref   : [D_in, D_out]  f32   = (1-alpha) * W_res
    b_ref       : [1, D_out]     f32   = fused bias (alpha & (1-alpha) terms)
    out_ref     : [Bt, D_out]    f32
    """
    acc = jnp.dot(paths_ref[...], w_bicep_ref[...],
                  preferred_element_type=jnp.float32)
    acc = acc + jnp.dot(x_ref[...], w_res_ref[...],
                        preferred_element_type=jnp.float32)
    out_ref[...] = (acc + b_ref[...]).astype(out_ref.dtype)


def _bicep_fused_identity_kernel(paths_ref, x_ref, w_bicep_ref, b_ref, oma_ref,
                                 out_ref):
    """Identity-residual case (D_in == D_out): no residual matmul / weight DMA.

    oma_ref : [1, 1] f32  = (1 - sigmoid(mix_weight))
    """
    acc = jnp.dot(paths_ref[...], w_bicep_ref[...],
                  preferred_element_type=jnp.float32)
    out_ref[...] = (acc + oma_ref[...] * x_ref[...] + b_ref[...]).astype(out_ref.dtype)


# --------------------------------------------------------------------------- #
# One-time algebraic weight fusion (param prep, NOT per-call input scaling)
# --------------------------------------------------------------------------- #
def prepare_fused_params(params):
    """Fold path_aggregator, output_mapper, biases and sigmoid(mix) into one
    matmul weight + bias (per the performance review).

      bicep[b,d] = sum_{p,s} paths[b,p,s]*w_agg[s]*w_out[p,d]
                   + b_agg*sum_p w_out[p,d] + b_out[d]
      out        = alpha*bicep + (1-alpha)*residual
    """
    alpha = jax.nn.sigmoid(jnp.asarray(params["mix_weight"], jnp.float32))
    w_agg = jnp.asarray(params["w_agg"], jnp.float32)[0]          # (S,)
    w_out = jnp.asarray(params["w_out"], jnp.float32)             # (P, D_out)
    P, d_out = w_out.shape

    # Row-major flatten index p*S + s matches paths.reshape(B, P*S).
    w_eff = (w_out[:, None, :] * w_agg[None, :, None]).reshape(P * w_agg.shape[0],
                                                               d_out)
    fused = {"w_bicep": alpha * w_eff}                            # (P*S, D_out)

    b = alpha * (jnp.asarray(params["b_out"], jnp.float32)[0]
                 + jnp.asarray(params["b_agg"], jnp.float32) * jnp.sum(w_out, axis=0))
    if "w_res" in params:                                         # Linear residual
        fused["w_res"] = (1.0 - alpha) * jnp.asarray(params["w_res"], jnp.float32)
        b = b + (1.0 - alpha) * jnp.asarray(params["b_res"], jnp.float32)[0]
    else:                                                         # Identity residual
        fused["one_minus_alpha"] = (1.0 - alpha).reshape(1, 1)
    fused["b"] = b.reshape(1, d_out)
    return fused


# --------------------------------------------------------------------------- #
# Wrapper
# --------------------------------------------------------------------------- #
def clean_bicep_layer(x, paths, params, fused=None, *, b_tile=None):
    """x: [B, D_in] or [B, T, D_in]; paths: [B, P, S]; returns [B, D_out] f32."""
    # TODO(synk): for 3-D inputs the torch module broadcasts the residual over the
    # full sequence; here we follow the common 2-D path (last-timestep residual).
    if x.ndim == 3:
        x = x[:, -1, :]
    x = x.astype(jnp.float32)
    B, d_in = x.shape
    _, P, S = paths.shape
    d_out = params["w_out"].shape[1]

    if fused is None:
        fused = prepare_fused_params(params)
    identity_residual = "w_res" not in fused

    # Row-major flatten: index p*S + s matches W_eff built in prepare_fused_params.
    paths_flat = paths.astype(jnp.float32).reshape(B, P * S)

    # B-tiling: single shot at small B (grid-step overhead ~0.35us would dominate);
    # for large B, tile in multiples of 8 sized so the double-buffered input blocks
    # stay well within v7x's 32 MiB scoped-VMEM default (64 MiB physical).
    if b_tile is None:
        if B <= 256:
            b_tile = B
        else:
            row_bytes = (P * S + d_in + d_out) * 4
            budget = 16 * 1024 * 1024
            b_tile = max(8, min(1024, (budget // (2 * row_bytes)) // 8 * 8))
    n_tiles = pl.cdiv(B, b_tile)

    paths_spec = pl.BlockSpec((b_tile, P * S), lambda i: (i, 0))
    x_spec     = pl.BlockSpec((b_tile, d_in), lambda i: (i, 0))
    wb_spec    = pl.BlockSpec((P * S, d_out), lambda i: (0, 0))
    b_spec     = pl.BlockSpec((1, d_out), lambda i: (0, 0))
    out_spec   = pl.BlockSpec((b_tile, d_out), lambda i: (i, 0))
    cparams = pltpu.CompilerParams(dimension_semantics=("parallel",))

    if identity_residual:
        oma_spec = pl.BlockSpec((1, 1), lambda i: (0, 0))
        return pl.pallas_call(
            _bicep_fused_identity_kernel,
            out_shape=jax.ShapeDtypeStruct((B, d_out), jnp.float32),
            grid=(n_tiles,),
            in_specs=[paths_spec, x_spec, wb_spec, b_spec, oma_spec],
            out_specs=out_spec,
            compiler_params=cparams,
        )(paths_flat, x, fused["w_bicep"], fused["b"], fused["one_minus_alpha"])

    wr_spec = pl.BlockSpec((d_in, d_out), lambda i: (0, 0))
    return pl.pallas_call(
        _bicep_fused_kernel,
        out_shape=jax.ShapeDtypeStruct((B, d_out), jnp.float32),
        grid=(n_tiles,),
        in_specs=[paths_spec, x_spec, wb_spec, wr_spec, b_spec],
        out_specs=out_spec,
        compiler_params=cparams,
    )(paths_flat, x, fused["w_bicep"], fused["w_res"], fused["b"])


# --------------------------------------------------------------------------- #
# Parameter init (shapes follow the module __init__; weights stored [in, out])
# --------------------------------------------------------------------------- #
def init_params(key, input_size, output_size, n_paths, n_steps):
    ks = jax.random.split(key, 6)
    S = n_steps + 1
    # path_aggregator: nn.Linear(S, 1) -> weight [1, S], bias scalar
    w_agg = jax.random.normal(ks[0], (1, S), jnp.float32) / jnp.sqrt(S)
    b_agg = jax.random.normal(ks[1], (), jnp.float32) * 0.01
    # output_mapper: nn.Linear(n_paths, output_size) -> stored transposed [P, D_out]
    w_out = jax.random.normal(ks[2], (n_paths, output_size), jnp.float32) / jnp.sqrt(n_paths)
    b_out = jax.random.normal(ks[3], (1, output_size), jnp.float32) * 0.01
    params = dict(w_agg=w_agg, b_agg=b_agg, w_out=w_out, b_out=b_out,
                  mix_weight=jnp.array(0.5, jnp.float32))
    # residual_layer: nn.Linear(input_size, output_size) or Identity (no weights)
    if input_size != output_size:
        params["w_res"] = (jax.random.normal(ks[4], (input_size, output_size), jnp.float32)
                           / jnp.sqrt(input_size))
        params["b_res"] = jax.random.normal(ks[5], (1, output_size), jnp.float32) * 0.01
    return params


# --------------------------------------------------------------------------- #
# Pure-JAX reference of the (unfused) module math
# --------------------------------------------------------------------------- #
def reference(x, paths, params):
    if x.ndim == 3:
        x = x[:, -1, :]
    pf = jnp.einsum("bps,s->bp", paths, params["w_agg"][0]) + params["b_agg"]
    bicep = pf @ params["w_out"] + params["b_out"]
    resid = (x @ params["w_res"] + params["b_res"]) if "w_res" in params else x
    a = jax.nn.sigmoid(params["mix_weight"])
    return a * bicep + (1.0 - a) * resid


if __name__ == "__main__":
    # CleanBICEPLayer(32, 16, bicep_paths=64, bicep_steps=30)
    B, D_IN, D_OUT = 2, 32, 16
    N_PATHS, N_STEPS = 64, 30

    key = jax.random.PRNGKey(0)
    k_x, k_paths, k_params, k_x2, k_paths2, k_params2 = jax.random.split(key, 6)

    # Case 1: D_in != D_out  ->  Linear residual, fully fused into two MXU dots.
    x = jax.random.normal(k_x, (B, D_IN), jnp.float32)
    paths = jax.random.normal(k_paths, (B, N_PATHS, N_STEPS + 1), jnp.float32)
    params = init_params(k_params, D_IN, D_OUT, N_PATHS, N_STEPS)
    fused = prepare_fused_params(params)            # one-time weight fusion
    out = jax.block_until_ready(clean_bicep_layer(x, paths, params, fused))
    ref = reference(x, paths, params)
    assert out.shape == (B, D_OUT)
    assert jnp.allclose(out, ref, atol=1e-4, rtol=1e-4), "mismatch (linear residual)"

    # Case 2: D_in == D_out  ->  Identity residual (no residual matmul / weight DMA).
    x2 = jax.random.normal(k_x2, (B, D_OUT), jnp.float32)
    paths2 = jax.random.normal(k_paths2, (B, N_PATHS, N_STEPS + 1), jnp.float32)
    params2 = init_params(k_params2, D_OUT, D_OUT, N_PATHS, N_STEPS)
    out2 = jax.block_until_ready(clean_bicep_layer(x2, paths2, params2))
    ref2 = reference(x2, paths2, params2)
    assert out2.shape == (B, D_OUT)
    assert jnp.allclose(out2, ref2, atol=1e-4, rtol=1e-4), "mismatch (identity residual)"

    print("KERNEL_OK")
</pallas_src>

<mosaic_0001>
module attributes {stable_mosaic.version = 11 : i64} {
  func.func @_bicep_fused_kernel(%arg0: i32, %arg1: memref<2x1984xf32, #tpu.memory_space<vmem>>, %arg2: memref<2x32xf32, #tpu.memory_space<vmem>>, %arg3: memref<1984x16xf32, #tpu.memory_space<vmem>>, %arg4: memref<32x16xf32, #tpu.memory_space<vmem>>, %arg5: memref<1x16xf32, #tpu.memory_space<vmem>>, %arg6: memref<2x16xf32, #tpu.memory_space<vmem>>) attributes {dimension_semantics = [#tpu.dimension_semantics<parallel>], iteration_bounds = array<i64: 1>, scalar_prefetch = 0 : i64, scratch_operands = 0 : i64, tpu.core_type = #tpu.core_type<tc>, window_params = [{transform_indices = @transform_0, window_bounds = array<i64: 2, 1984>}, {transform_indices = @transform_1, window_bounds = array<i64: 2, 32>}, {pipeline_mode = #tpu.pipeline_mode<synchronous>, transform_indices = @transform_2, window_bounds = array<i64: 1984, 16>}, {pipeline_mode = #tpu.pipeline_mode<synchronous>, transform_indices = @transform_3, window_bounds = array<i64: 32, 16>}, {pipeline_mode = #tpu.pipeline_mode<synchronous>, transform_indices = @transform_4, window_bounds = array<i64: 1, 16>}, {transform_indices = @transform_5, window_bounds = array<i64: 2, 16>}]} {
    %c0 = arith.constant 0 : index
    %c0_0 = arith.constant 0 : index
    %0 = vector.load %arg1[%c0, %c0_0] : memref<2x1984xf32, #tpu.memory_space<vmem>>, vector<2x1984xf32>
    %c0_1 = arith.constant 0 : index
    %c0_2 = arith.constant 0 : index
    %1 = vector.load %arg3[%c0_1, %c0_2] : memref<1984x16xf32, #tpu.memory_space<vmem>>, vector<1984x16xf32>
    %cst = arith.constant dense<0.000000e+00> : vector<2x16xf32>
    %2 = tpu.matmul %0, %1, %cst {dimension_numbers = #tpu.dot_dimension_numbers<[1], [0], [0], [1], [0, 0, 1, 1], [], []>} : vector<2x1984xf32>, vector<1984x16xf32>, vector<2x16xf32> -> vector<2x16xf32>
    %c0_3 = arith.constant 0 : index
    %c0_4 = arith.constant 0 : index
    %3 = vector.load %arg2[%c0_3, %c0_4] : memref<2x32xf32, #tpu.memory_space<vmem>>, vector<2x32xf32>
    %c0_5 = arith.constant 0 : index
    %c0_6 = arith.constant 0 : index
    %4 = vector.load %arg4[%c0_5, %c0_6] : memref<32x16xf32, #tpu.memory_space<vmem>>, vector<32x16xf32>
    %cst_7 = arith.constant dense<0.000000e+00> : vector<2x16xf32>
    %5 = tpu.matmul %3, %4, %cst_7 {dimension_numbers = #tpu.dot_dimension_numbers<[1], [0], [0], [1], [0, 0, 1, 1], [], []>} : vector<2x32xf32>, vector<32x16xf32>, vector<2x16xf32> -> vector<2x16xf32>
    %6 = arith.addf %2, %5 : vector<2x16xf32>
    %c0_8 = arith.constant 0 : index
    %c0_9 = arith.constant 0 : index
    %7 = vector.load %arg5[%c0_8, %c0_9] : memref<1x16xf32, #tpu.memory_space<vmem>>, vector<1x16xf32>
    %8 = vector.broadcast %7 : vector<1x16xf32> to vector<2x16xf32>
    %9 = arith.addf %6, %8 : vector<2x16xf32>
    %c0_10 = arith.constant 0 : index
    %c0_11 = arith.constant 0 : index
    %10 = vector.load %arg6[%c0_10, %c0_11] : memref<2x16xf32, #tpu.memory_space<vmem>>, vector<2x16xf32>
    tpu.vector_store %arg6[%c0_10, %c0_11], %9 {strides = array<i32>} : memref<2x16xf32, #tpu.memory_space<vmem>>, vector<2x16xf32>,
    return
  }
  func.func @transform_0(%arg0: i32) -> (i32, i32) {
    %c0_i32 = arith.constant 0 : i32
    %c0_i32_0 = arith.constant 0 : i32
    return %arg0, %c0_i32 : i32, i32
  }
  func.func @transform_1(%arg0: i32) -> (i32, i32) {
    %c0_i32 = arith.constant 0 : i32
    %c0_i32_0 = arith.constant 0 : i32
    return %arg0, %c0_i32 : i32, i32
  }
  func.func @transform_2(%arg0: i32) -> (i32, i32) {
    %c0_i32 = arith.constant 0 : i32
    %c0_i32_0 = arith.constant 0 : i32
    %c0_i32_1 = arith.constant 0 : i32
    return %c0_i32, %c0_i32_0 : i32, i32
  }
  func.func @transform_3(%arg0: i32) -> (i32, i32) {
    %c0_i32 = arith.constant 0 : i32
    %c0_i32_0 = arith.constant 0 : i32
    %c0_i32_1 = arith.constant 0 : i32
    return %c0_i32, %c0_i32_0 : i32, i32
  }
  func.func @transform_4(%arg0: i32) -> (i32, i32) {
    %c0_i32 = arith.constant 0 : i32
    %c0_i32_0 = arith.constant 0 : i32
    %c0_i32_1 = arith.constant 0 : i32
    return %c0_i32, %c0_i32_0 : i32, i32
  }
  func.func @transform_5(%arg0: i32) -> (i32, i32) {
    %c0_i32 = arith.constant 0 : i32
    %c0_i32_0 = arith.constant 0 : i32
    return %arg0, %c0_i32 : i32, i32
  }
}

</mosaic_0001>

<bundles_post_ra>
// kernel: tpu_custom_call.1
= control target key start
LH: loop header
LB: loop body
LE: loop exit
PB: predicated region body
PF: predicated region fallthrough
CT: control target
= control target key end

     0   :  { %v1589_v3 = vmov 0.0|0.0   ;;  %vm1590_vm0 = vmmov 0   ;;  %v1591_v8 = vmov 0.0   ;;  %vm278_vm1 = vcmask 261120   ;;  %s2469_s0 = inlined_call_operand.vmem [shape: f32[2,1984], index: 0, kind: input, shape index: {}]   ;;  %s2470_s1 = inlined_call_operand.vmem [shape: f32[2,32], index: 1, kind: input, shape index: {}]   ;;  %s2471_s2 = inlined_call_operand.vmem [shape: f32[1984,16], index: 2, kind: input, shape index: {}]   ;;  %s2472_s3 = inlined_call_operand.vmem [shape: f32[32,16], index: 3, kind: input, shape index: {}]   ;;  %s2473_s4 = inlined_call_operand.vmem [shape: f32[1,16], index: 4, kind: input, shape index: {}]   ;;  %s2474_s5 = inlined_call_operand.hbm [shape: f32[2,16], index: 5, kind: output, shape index: {}]  }
   0x1   :  { %v274_v0 = vld [vmem:[%s2472_s3] sm:$0xff]  ;;  %v275_v1 = vld [vmem:[%s2472_s3 + $0x8] sm:$0xff]  ;;  %1290 = vmatprep.subr.bf16.mxu1 %v1589_v3  ;;  %1287 = vmatprep.mubr.msk.f32.mxu1 %vm1590_vm0, %v1591_v8  ;;  %v276_v11 = vld [vmem:[%s2472_s3 + $0x10] sm:$0xff]  ;;  %v1592_v51 = vmov 1983009808   ;;  %v360_v53 = vlaneseq }
   0x2   :  { %v73_v2 = vld [vmem:[%s2471_s2 + $0x180] sm:$0xff]  ;;  %v1291_v4 = vpack.c.bf16 %v275_v1, %v274_v0  ;;  %v74_v5 = vld [vmem:[%s2471_s2 + $0x188] sm:$0xff]  ;;  %v277_v12 = vld [vmem:[%s2472_s3 + $0x18] sm:$0xff]  ;;  %v358_v52 = vunpack.c.l.s4 %v1592_v51 }
   0x3   :  { %v57_v6 = vld [vmem:[%s2471_s2 + $0x100] sm:$0xff]  ;;  %v58_v7 = vld [vmem:[%s2471_s2 + $0x108] sm:$0xff]  ;;  %v1328_v9 = vpack.c.bf16 %v74_v5, %v73_v2  ;;  %v75_v13 = vld [vmem:[%s2471_s2 + $0x190] sm:$0xff]  ;;  %v1294_v14 = vpack.c.bf16 %v277_v12, %v276_v11 }
   0x4   :  { %v1330_v10 = vpack.c.bf16 %v58_v7, %v57_v6  ;;  %1292 = vmatpush3.bf16.msra.mxu1 %v1291_v4  ;;  %v76_v15 = vld [vmem:[%s2471_s2 + $0x198] sm:$0xff]  ;;  %v59_v16 = vld [vmem:[%s2471_s2 + $0x110] sm:$0xff]  ;;  %v41_v19 = vld [vmem:[%s2471_s2 + $0x80] sm:$0xff]  ;;  %v359_v2 = vunpack.c.0.s8 %v358_v52  ;;  %v361_v4 = vshrl.u32 %v360_v53, 7 }
   0x5   :  { %v60_v17 = vld [vmem:[%s2471_s2 + $0x118] sm:$0xff]  ;;  %1329 = vmatprep.subr.bf16.mxu0 %v1328_v9  ;;  %1293 = vmatprep.subr.bf16.mxu1 %v1589_v3  ;;  %v1332_v18 = vpack.c.bf16 %v76_v15, %v75_v13  ;;  %v42_v20 = vld [vmem:[%s2471_s2 + $0x88] sm:$0xff]  ;;  %v273_v23 = vld [vmem:[%s2470_s1] sm:$0x3] }
   0x6   :  { %1331 = vmatpush3.bf16.msra.mxu0 %v1330_v10  ;;  %v1334_v21 = vpack.c.bf16 %v60_v17, %v59_v16  ;;  %v1296_v22 = vpack.c.bf16 %v42_v20, %v41_v19  ;;  %v25_v24 = vld [vmem:[%s2471_s2] sm:$0xff]  ;;  %v26_v25 = vld [vmem:[%s2471_s2 + $0x8] sm:$0xff]  ;;  %v43_v32 = vld [vmem:[%s2471_s2 + $0x90] sm:$0xff]  ;;  %v1779_v17 = vsub.s32 %v359_v2, %v361_v4 }
   0x7   :  { %v77_v26 = vld [vmem:[%s2471_s2 + $0x1a0] sm:$0xff]  ;;  %1333 = vmatprep.subr.bf16.mxu0 %v1332_v18  ;;  %v78_v27 = vld [vmem:[%s2471_s2 + $0x1a8] sm:$0xff]  ;;  %v1298_v30 = vpack.c.bf16 %v26_v25, %v25_v24  ;;  %v44_v33 = vld [vmem:[%s2471_s2 + $0x98] sm:$0xff] }
   0x8   :  { %v61_v28 = vld [vmem:[%s2471_s2 + $0x120] sm:$0xff]  ;;  %v62_v29 = vld [vmem:[%s2471_s2 + $0x128] sm:$0xff]  ;;  %1295 = vmatpush3.bf16.msra.mxu1 %v1294_v14  ;;  %v1336_v31 = vpack.c.bf16 %v78_v27, %v77_v26  ;;  %v27_v34 = vld [vmem:[%s2471_s2 + $0x10] sm:$0xff]  ;;  %v1300_v35 = vpack.c.bf16 %v44_v33, %v43_v32 }
   0x9   :  { %1297 = vmatprep.subr.bf16.mxu1 %v1296_v22  ;;  %v28_v36 = vld [vmem:[%s2471_s2 + $0x18] sm:$0xff]  ;;  %v79_v37 = vld [vmem:[%s2471_s2 + $0x1b0] sm:$0xff]  ;;  %v1338_v39 = vpack.c.bf16 %v62_v29, %v61_v28  ;;  %v45_v40 = vld [vmem:[%s2471_s2 + $0xa0] sm:$0xff] }
   0xa   :  { %v80_v38 = vld [vmem:[%s2471_s2 + $0x1b8] sm:$0xff]  ;;  %1335 = vmatpush3.bf16.msra.mxu0 %v1334_v21  ;;  %v63_v42 = vld [vmem:[%s2471_s2 + $0x130] sm:$0xff]  ;;  %v46_v44 = vld [vmem:[%s2471_s2 + $0xa8] sm:$0xff]  ;;  %v1302_v45 = vpack.c.bf16 %v28_v36, %v27_v34 }
   0xb   :  { %1288 = vmatmul.mubr.msk.f32.vlgmr.msra.gmra.mrb[0].mxu1 %vm278_vm1, %v273_v23  ;;  %1337 = vmatprep.subr.bf16.mxu0 %v1336_v31  ;;  %v1340_v41 = vpack.c.bf16 %v80_v38, %v79_v37  ;;  %v64_v43 = vld [vmem:[%s2471_s2 + $0x138] sm:$0xff]  ;;  %v81_v46 = vld [vmem:[%s2471_s2 + $0x1c0] sm:$0xff]  ;;  %v82_v47 = vld [vmem:[%s2471_s2 + $0x1c8] sm:$0xff]  ;;  %v1304_v48 = vpack.c.bf16 %v46_v44, %v45_v40 }
   0xc   :  { %1299 = vmatpush3.bf16.msra.mxu1 %v1298_v30  ;;  %v29_v49 = vld [vmem:[%s2471_s2 + $0x20] sm:$0xff]  ;;  %v30_v50 = vld [vmem:[%s2471_s2 + $0x28] sm:$0xff]  ;;  %v1342_v54 = vpack.c.bf16 %v64_v43, %v63_v42  ;;  %v47_v55 = vld [vmem:[%s2471_s2 + $0xb0] sm:$0xff]  ;;  %v1344_v57 = vpack.c.bf16 %v82_v47, %v81_v46 }
   0xd   :  { %1301 = vmatprep.subr.bf16.mxu1 %v1300_v35  ;;  %v48_v56 = vld [vmem:[%s2471_s2 + $0xb8] sm:$0xff]  ;;  %v65_v58 = vld [vmem:[%s2471_s2 + $0x140] sm:$0xff]  ;;  %v66_v59 = vld [vmem:[%s2471_s2 + $0x148] sm:$0xff]  ;;  %v1306_v60 = vpack.c.bf16 %v30_v50, %v29_v49 }
   0xe   :  { %1339 = vmatpush3.bf16.msra.mxu0 %v1338_v39  ;;  %v83_v61 = vld [vmem:[%s2471_s2 + $0x1d0] sm:$0xff]  ;;  %v84_v62 = vld [vmem:[%s2471_s2 + $0x1d8] sm:$0xff]  ;;  %v1308_v63 = vpack.c.bf16 %v48_v56, %v47_v55  ;;  %v1346_v5 = vpack.c.bf16 %v66_v59, %v65_v58  ;;  %v49_v6 = vld [vmem:[%s2471_s2 + $0xc0] sm:$0xff] }
   0xf   :  { %1341 = vmatprep.subr.bf16.mxu0 %v1340_v41  ;;  %v31_v0 = vld [vmem:[%s2471_s2 + $0x30] sm:$0xff]  ;;  %v32_v1 = vld [vmem:[%s2471_s2 + $0x38] sm:$0xff]  ;;  %v50_v7 = vld [vmem:[%s2471_s2 + $0xc8] sm:$0xff]  ;;  %v1348_v8 = vpack.c.bf16 %v84_v62, %v83_v61 }
  0x10   :  { %1303 = vmatpush3.bf16.msra.mxu1 %v1302_v45  ;;  %v67_v9 = vld [vmem:[%s2471_s2 + $0x150] sm:$0xff]  ;;  %v68_v10 = vld [vmem:[%s2471_s2 + $0x158] sm:$0xff]  ;;  %v1310_v11 = vpack.c.bf16 %v32_v1, %v31_v0  ;;  %v85_v12 = vld [vmem:[%s2471_s2 + $0x1e0] sm:$0xff]  ;;  %v1312_v14 = vpack.c.bf16 %v50_v7, %v49_v6 }
  0x11   :  { %1305 = vmatprep.subr.bf16.mxu1 %v1304_v48  ;;  %v86_v13 = vld [vmem:[%s2471_s2 + $0x1e8] sm:$0xff]  ;;  %v33_v15 = vld [vmem:[%s2471_s2 + $0x40] sm:$0xff]  ;;  %v1350_v18 = vpack.c.bf16 %v68_v10, %v67_v9  ;;  %v51_v19 = vld [vmem:[%s2471_s2 + $0xd0] sm:$0xff] }
  0x12   :  { %1343 = vmatpush3.bf16.msra.mxu0 %v1342_v54  ;;  %v34_v16 = vld [vmem:[%s2471_s2 + $0x48] sm:$0xff]  ;;  %v52_v20 = vld [vmem:[%s2471_s2 + $0xd8] sm:$0xff]  ;;  %v21_v21 = vld [vmem:[%s2469_s0] sm:$0xff]  ;;  %v1352_v22 = vpack.c.bf16 %v86_v13, %v85_v12 }
  0x13   :  { %1345 = vmatprep.subr.bf16.mxu0 %v1344_v57  ;;  %v69_v23 = vld [vmem:[%s2471_s2 + $0x160] sm:$0xff]  ;;  %v70_v24 = vld [vmem:[%s2471_s2 + $0x168] sm:$0xff]  ;;  %v356_v25 = vcombine.high %v21_v21, %v21_v21  ;;  %v1797_v26 = vrot.slane %v21_v21, %v1779_v17  ;;  %v1314_v27 = vpack.c.bf16 %v34_v16, %v33_v15  ;;  %v87_v28 = vld [vmem:[%s2471_s2 + $0x1f0] sm:$0xff]  ;;  %v1316_v30 = vpack.c.bf16 %v52_v20, %v51_v19 }
  0x14   :  { %1307 = vmatpush3.bf16.msra.mxu1 %v1306_v60  ;;  %v88_v29 = vld [vmem:[%s2471_s2 + $0x1f8] sm:$0xff]  ;;  %v35_v31 = vld [vmem:[%s2471_s2 + $0x50] sm:$0xff]  ;;  %v1354_v35 = vpack.c.bf16 %v70_v24, %v69_v23  ;;  %v53_v36 = vld [vmem:[%s2471_s2 + $0xe0] sm:$0xff] }
  0x15   :  { %1309 = vmatprep.subr.bf16.mxu1 %v1308_v63  ;;  %v36_v32 = vld [vmem:[%s2471_s2 + $0x58] sm:$0xff]  ;;  %v370_v33 = vrot.slane %v356_v25, %v1779_v17  ;;  %v371_v34 = vcombine.high %v1797_v26, %v1797_v26  ;;  %v54_v37 = vld [vmem:[%s2471_s2 + $0xe8] sm:$0xff]  ;;  %v1356_v38 = vpack.c.bf16 %v88_v29, %v87_v28  ;;  %v71_v39 = vld [vmem:[%s2471_s2 + $0x170] sm:$0xff] }
  0x16   :  { %1347 = vmatpush3.bf16.msra.mxu0 %v1346_v5  ;;  %v72_v40 = vld [vmem:[%s2471_s2 + $0x178] sm:$0xff]  ;;  %v1318_v42 = vpack.c.bf16 %v36_v32, %v35_v31  ;;  %v137_v43 = vld [vmem:[%s2471_s2 + $0x380] sm:$0xff]  ;;  %v138_v44 = vld [vmem:[%s2471_s2 + $0x388] sm:$0xff]  ;;  %v1320_v45 = vpack.c.bf16 %v54_v37, %v53_v36 }
  0x17   :  { %1349 = vmatprep.subr.bf16.mxu0 %v1348_v8  ;;  %v372_v41 = vcombine.high %v370_v33, %v370_v33  ;;  %506 = vmatprep.mubr.f32.mxu1 %v371_v34  ;;  %v37_v46 = vld [vmem:[%s2471_s2 + $0x60] sm:$0xff]  ;;  %v38_v47 = vld [vmem:[%s2471_s2 + $0x68] sm:$0xff]  ;;  %v1358_v48 = vpack.c.bf16 %v72_v40, %v71_v39  ;;  %v55_v49 = vld [vmem:[%s2471_s2 + $0xf0] sm:$0xff]  ;;  %v1392_v51 = vpack.c.bf16 %v138_v44, %v137_v43 }
  0x18   :  { %1311 = vmatpush3.bf16.msra.mxu1 %v1310_v11  ;;  %v56_v50 = vld [vmem:[%s2471_s2 + $0xf8] sm:$0xff]  ;;  %v121_v52 = vld [vmem:[%s2471_s2 + $0x300] sm:$0xff]  ;;  %v122_v53 = vld [vmem:[%s2471_s2 + $0x308] sm:$0xff]  ;;  %v1322_v54 = vpack.c.bf16 %v38_v47, %v37_v46 }
  0x19   :  { %1313 = vmatprep.subr.bf16.mxu1 %v1312_v14  ;;  %576 = vmatprep.mubr.f32.mxu0 %v372_v41  ;;  %v139_v55 = vld [vmem:[%s2471_s2 + $0x390] sm:$0xff]  ;;  %v140_v56 = vld [vmem:[%s2471_s2 + $0x398] sm:$0xff]  ;;  %v1324_v57 = vpack.c.bf16 %v56_v50, %v55_v49  ;;  %v1394_v60 = vpack.c.bf16 %v122_v53, %v121_v52  ;;  %v105_v61 = vld [vmem:[%s2471_s2 + $0x280] sm:$0xff] }
  0x1a   :  { %1351 = vmatpush3.bf16.msra.mxu0 %v1350_v18  ;;  %v39_v58 = vld [vmem:[%s2471_s2 + $0x70] sm:$0xff]  ;;  %v40_v59 = vld [vmem:[%s2471_s2 + $0x78] sm:$0xff]  ;;  %v106_v62 = vld [vmem:[%s2471_s2 + $0x288] sm:$0xff]  ;;  %v1396_v63 = vpack.c.bf16 %v140_v56, %v139_v55 }
  0x1b   :  { %1353 = vmatprep.subr.bf16.mxu0 %v1352_v22  ;;  %v123_v0 = vld [vmem:[%s2471_s2 + $0x310] sm:$0xff]  ;;  %v124_v1 = vld [vmem:[%s2471_s2 + $0x318] sm:$0xff]  ;;  %v1326_v2 = vpack.c.bf16 %v40_v59, %v39_v58  ;;  %v141_v4 = vld [vmem:[%s2471_s2 + $0x3a0] sm:$0xff]  ;;  %v1360_v6 = vpack.c.bf16 %v106_v62, %v105_v61 }
  0x1c   :  { %1315 = vmatpush3.bf16.msra.mxu1 %v1314_v27  ;;  %v142_v5 = vld [vmem:[%s2471_s2 + $0x3a8] sm:$0xff]  ;;  %v89_v7 = vld [vmem:[%s2471_s2 + $0x200] sm:$0xff]  ;;  %v1398_v9 = vpack.c.bf16 %v124_v1, %v123_v0  ;;  %v107_v10 = vld [vmem:[%s2471_s2 + $0x290] sm:$0xff] }
  0x1d   :  { %1317 = vmatprep.subr.bf16.mxu1 %v1316_v30  ;;  %v90_v8 = vld [vmem:[%s2471_s2 + $0x208] sm:$0xff]  ;;  %v108_v11 = vld [vmem:[%s2471_s2 + $0x298] sm:$0xff]  ;;  %v1400_v12 = vpack.c.bf16 %v142_v5, %v141_v4  ;;  %v125_v13 = vld [vmem:[%s2471_s2 + $0x320] sm:$0xff] }
  0x1e   :  { %1355 = vmatpush3.bf16.msra.mxu0 %v1354_v35  ;;  %v126_v14 = vld [vmem:[%s2471_s2 + $0x328] sm:$0xff]  ;;  %v1362_v15 = vpack.c.bf16 %v90_v8, %v89_v7  ;;  %v143_v16 = vld [vmem:[%s2471_s2 + $0x3b0] sm:$0xff]  ;;  %v144_v18 = vld [vmem:[%s2471_s2 + $0x3b8] sm:$0xff]  ;;  %v1364_v19 = vpack.c.bf16 %v108_v11, %v107_v10 }
  0x1f   :  { %1357 = vmatprep.subr.bf16.mxu0 %v1356_v38  ;;  %v91_v20 = vld [vmem:[%s2471_s2 + $0x210] sm:$0xff]  ;;  %v92_v21 = vld [vmem:[%s2471_s2 + $0x218] sm:$0xff]  ;;  %v1402_v22 = vpack.c.bf16 %v126_v14, %v125_v13  ;;  %v109_v23 = vld [vmem:[%s2471_s2 + $0x2a0] sm:$0xff]  ;;  %v1404_v25 = vpack.c.bf16 %v144_v18, %v143_v16 }
  0x20   :  { %1319 = vmatpush3.bf16.msra.mxu1 %v1318_v42  ;;  %v110_v24 = vld [vmem:[%s2471_s2 + $0x2a8] sm:$0xff]  ;;  %v127_v27 = vld [vmem:[%s2471_s2 + $0x330] sm:$0xff]  ;;  %v128_v28 = vld [vmem:[%s2471_s2 + $0x338] sm:$0xff]  ;;  %v1366_v30 = vpack.c.bf16 %v92_v21, %v91_v20 }
  0x21   :  { %1321 = vmatprep.subr.bf16.mxu1 %v1320_v45  ;;  %v22_v29 = vld [vmem:[%s2469_s0 + $0x8] sm:$0xff]  ;;  %v1368_v34 = vpack.c.bf16 %v110_v24, %v109_v23  ;;  %v93_v35 = vld [vmem:[%s2471_s2 + $0x220] sm:$0xff]  ;;  %v1406_v37 = vpack.c.bf16 %v128_v28, %v127_v27  ;;  %v111_v38 = vld [vmem:[%s2471_s2 + $0x2b0] sm:$0xff] }
  0x22   :  { %1359 = vmatpush3.bf16.msra.mxu0 %v1358_v48  ;;  %v146_v31 = vld [vmem:[%s2471_s2 + $0x3c8] sm:$0xff]  ;;  %v373_v32 = vcombine.high %v22_v29, %v22_v29  ;;  %v112_v39 = vld [vmem:[%s2471_s2 + $0x2b8] sm:$0xff]  ;;  %v129_v43 = vld [vmem:[%s2471_s2 + $0x340] sm:$0xff] }
  0x23   :  { %1393 = vmatprep.subr.bf16.mxu0 %v1392_v51  ;;  %v94_v36 = vld [vmem:[%s2471_s2 + $0x228] sm:$0xff]  ;;  %v147_v46 = vld [vmem:[%s2471_s2 + $0x3d0] sm:$0xff]  ;;  %v148_v47 = vld [vmem:[%s2471_s2 + $0x3d8] sm:$0xff]  ;;  %v1372_v49 = vpack.c.bf16 %v112_v39, %v111_v38 }
  0x24   :  { %1323 = vmatpush3.bf16.msra.mxu1 %v1322_v54  ;;  %v1948_v40 = vrot.slane %v373_v32, %v1779_v17  ;;  %v130_v44 = vld [vmem:[%s2471_s2 + $0x348] sm:$0xff]  ;;  %v1370_v45 = vpack.c.bf16 %v94_v36, %v93_v35  ;;  %v95_v50 = vld [vmem:[%s2471_s2 + $0x230] sm:$0xff]  ;;  %v96_v51 = vld [vmem:[%s2471_s2 + $0x238] sm:$0xff]  ;;  %v1412_v55 = vpack.c.bf16 %v148_v47, %v147_v46 }
  0x25   :  { %577 = vmatmul.mubr.f32.vlgmr.msra.gmra.mrb[0].mxu0 %v370_v33  ;;  %1325 = vmatprep.subr.bf16.mxu1 %v1324_v57  ;;  %v1933_v33 = vrot.slane %v22_v29, %v1779_v17  ;;  %v1410_v52 = vpack.c.bf16 %v130_v44, %v129_v43  ;;  %v113_v53 = vld [vmem:[%s2471_s2 + $0x2c0] sm:$0xff]  ;;  %v114_v54 = vld [vmem:[%s2471_s2 + $0x2c8] sm:$0xff]  ;;  %v131_v56 = vld [vmem:[%s2471_s2 + $0x350] sm:$0xff]  ;;  %v1374_v58 = vpack.c.bf16 %v96_v51, %v95_v50 }
  0x26   :  { %1395 = vmatpush3.bf16.msra.mxu0 %v1394_v60  ;;  %v389_v48 = vcombine.high %v1948_v40, %v1948_v40  ;;  %v132_v57 = vld [vmem:[%s2471_s2 + $0x358] sm:$0xff]  ;;  %v149_v59 = vld [vmem:[%s2471_s2 + $0x3e0] sm:$0xff]  ;;  %v150_v60 = vld [vmem:[%s2471_s2 + $0x3e8] sm:$0xff]  ;;  %v1376_v61 = vpack.c.bf16 %v114_v54, %v113_v53 }
  0x27   :  { %1397 = vmatprep.subr.bf16.mxu0 %v1396_v63  ;;  %v388_v41 = vcombine.high %v1933_v33, %v1933_v33  ;;  %v97_v62 = vld [vmem:[%s2471_s2 + $0x240] sm:$0xff]  ;;  %v98_v63 = vld [vmem:[%s2471_s2 + $0x248] sm:$0xff]  ;;  %v1414_v0 = vpack.c.bf16 %v132_v57, %v131_v56  ;;  %v115_v1 = vld [vmem:[%s2471_s2 + $0x2d0] sm:$0xff]  ;;  %v1416_v4 = vpack.c.bf16 %v150_v60, %v149_v59 }
  0x28   :  { %1327 = vmatpush3.bf16.msra.mxu1 %v1326_v2  ;;  %716 = vmatprep.mubr.f32.mxu0 %v389_v48  ;;  %v116_v2 = vld [vmem:[%s2471_s2 + $0x2d8] sm:$0xff]  ;;  %v133_v5 = vld [vmem:[%s2471_s2 + $0x360] sm:$0xff]  ;;  %v1378_v7 = vpack.c.bf16 %v98_v63, %v97_v62  ;;  %v151_v8 = vld [vmem:[%s2471_s2 + $0x3f0] sm:$0xff] }
  0x29   :  { %1361 = vmatprep.subr.bf16.mxu1 %v1360_v6  ;;  %v134_v6 = vld [vmem:[%s2471_s2 + $0x368] sm:$0xff]  ;;  %v1380_v10 = vpack.c.bf16 %v116_v2, %v115_v1  ;;  %v99_v11 = vld [vmem:[%s2471_s2 + $0x250] sm:$0xff]  ;;  %v117_v14 = vld [vmem:[%s2471_s2 + $0x2e0] sm:$0xff] }
  0x2a   :  { %1399 = vmatpush3.bf16.msra.mxu0 %v1398_v9  ;;  %v152_v9 = vld [vmem:[%s2471_s2 + $0x3f8] sm:$0xff]  ;;  %v1418_v13 = vpack.c.bf16 %v134_v6, %v133_v5  ;;  %v135_v18 = vld [vmem:[%s2471_s2 + $0x370] sm:$0xff]  ;;  %v201_v21 = vld [vmem:[%s2471_s2 + $0x580] sm:$0xff] }
  0x2b   :  { %507 = vmatmul.mubr.f32.vlgmr.msra.gmra.mrb[2].mxu1 %v1797_v26  ;;  %1401 = vmatprep.subr.bf16.mxu0 %v1400_v12  ;;  %v145_v26 = vld [vmem:[%s2471_s2 + $0x3c0] sm:$0xff]  ;;  %v100_v12 = vld [vmem:[%s2471_s2 + $0x258] sm:$0xff]  ;;  %v1420_v16 = vpack.c.bf16 %v152_v9, %v151_v8  ;;  %v119_v28 = vld [vmem:[%s2471_s2 + $0x2f0] sm:$0xff] }
  0x2c   :  { %1363 = vmatpush3.bf16.msra.mxu1 %v1362_v15  ;;  %v1408_v42 = vpack.c.bf16 %v146_v31, %v145_v26  ;;  %646 = vmatprep.mubr.f32.mxu1 %v388_v41  ;;  %v118_v15 = vld [vmem:[%s2471_s2 + $0x2e8] sm:$0xff]  ;;  %v1382_v20 = vpack.c.bf16 %v100_v12, %v99_v11  ;;  %v101_v24 = vld [vmem:[%s2471_s2 + $0x260] sm:$0xff]  ;;  %v120_v29 = vld [vmem:[%s2471_s2 + $0x2f8] sm:$0xff] }
  0x2d   :  { %1365 = vmatprep.subr.bf16.mxu1 %v1364_v19  ;;  %v136_v19 = vld [vmem:[%s2471_s2 + $0x378] sm:$0xff]  ;;  %v1384_v23 = vpack.c.bf16 %v118_v15, %v117_v14  ;;  %v185_v26 = vld [vmem:[%s2471_s2 + $0x500] sm:$0xff]  ;;  %v186_v31 = vld [vmem:[%s2471_s2 + $0x508] sm:$0xff]  ;;  %v1388_v36 = vpack.c.bf16 %v120_v29, %v119_v28 }
  0x2e   :  { %1403 = vmatpush3.bf16.msra.mxu0 %v1402_v22  ;;  %v202_v22 = vld [vmem:[%s2471_s2 + $0x588] sm:$0xff]  ;;  %v1422_v27 = vpack.c.bf16 %v136_v19, %v135_v18  ;;  %v204_v35 = vld [vmem:[%s2471_s2 + $0x598] sm:$0xff]  ;;  %v23_v39 = vld [vmem:[%s2469_s0 + $0x10] sm:$0xff]  ;;  %v1458_v41 = vpack.c.bf16 %v186_v31, %v185_v26 }
  0x2f   :  { %1405 = vmatprep.subr.bf16.mxu0 %v1404_v25  ;;  %v102_v25 = vld [vmem:[%s2471_s2 + $0x268] sm:$0xff]  ;;  %v104_v38 = vld [vmem:[%s2471_s2 + $0x278] sm:$0xff]  ;;  %v390_v44 = vcombine.high %v23_v39, %v23_v39  ;;  %v187_v46 = vld [vmem:[%s2471_s2 + $0x510] sm:$0xff] }
  0x30   :  { %1367 = vmatpush3.bf16.msra.mxu1 %v1366_v30  ;;  %v1456_v30 = vpack.c.bf16 %v202_v22, %v201_v21  ;;  %v1386_v32 = vpack.c.bf16 %v102_v25, %v101_v24  ;;  %v170_v43 = vld [vmem:[%s2471_s2 + $0x488] sm:$0xff]  ;;  %v188_v47 = vld [vmem:[%s2471_s2 + $0x518] sm:$0xff]  ;;  %v153_v54 = vld [vmem:[%s2471_s2 + $0x400] sm:$0xff] }
  0x31   :  { %1369 = vmatprep.subr.bf16.mxu1 %v1368_v34  ;;  %v203_v34 = vld [vmem:[%s2471_s2 + $0x590] sm:$0xff]  ;;  %v206_v50 = vld [vmem:[%s2471_s2 + $0x5a8] sm:$0xff]  ;;  %v2090_v51 = vrot.slane %v390_v44, %v1779_v17  ;;  %v1462_v56 = vpack.c.bf16 %v188_v47, %v187_v46  ;;  %v189_v60 = vld [vmem:[%s2471_s2 + $0x520] sm:$0xff] }
  0x32   :  { %1407 = vmatpush3.bf16.msra.mxu0 %v1406_v37  ;;  %v103_v37 = vld [vmem:[%s2471_s2 + $0x270] sm:$0xff]  ;;  %v156_v5 = vld [vmem:[%s2471_s2 + $0x418] sm:$0xff]  ;;  %v174_v8 = vld [vmem:[%s2471_s2 + $0x4a8] sm:$0xff] }
  0x33   :  { %1409 = vmatprep.subr.bf16.mxu0 %v1408_v42  ;;  %v169_v42 = vld [vmem:[%s2471_s2 + $0x480] sm:$0xff]  ;;  %v1390_v48 = vpack.c.bf16 %v104_v38, %v103_v37  ;;  %v171_v57 = vld [vmem:[%s2471_s2 + $0x490] sm:$0xff]  ;;  %v192_v11 = vld [vmem:[%s2471_s2 + $0x538] sm:$0xff] }
  0x34   :  { %1371 = vmatpush3.bf16.msra.mxu1 %v1370_v45  ;;  %v1460_v45 = vpack.c.bf16 %v204_v35, %v203_v34  ;;  %v1424_v53 = vpack.c.bf16 %v170_v43, %v169_v42  ;;  %v207_v63 = vld [vmem:[%s2471_s2 + $0x5b0] sm:$0xff]  ;;  %v157_v15 = vld [vmem:[%s2471_s2 + $0x420] sm:$0xff]  ;;  %v162_v43 = vld [vmem:[%s2471_s2 + $0x448] sm:$0xff] }
  0x35   :  { %1373 = vmatprep.subr.bf16.mxu1 %v1372_v49  ;;  %v205_v49 = vld [vmem:[%s2471_s2 + $0x5a0] sm:$0xff]  ;;  %v175_v19 = vld [vmem:[%s2471_s2 + $0x4b0] sm:$0xff]  ;;  %v180_v46 = vld [vmem:[%s2471_s2 + $0x4d8] sm:$0xff] }
  0x36   :  { %1411 = vmatpush3.bf16.msra.mxu0 %v1410_v52  ;;  %v2093_v52 = vrot.slane %v23_v39, %v1779_v17  ;;  %v1464_v59 = vpack.c.bf16 %v206_v50, %v205_v49  ;;  %v193_v22 = vld [vmem:[%s2471_s2 + $0x540] sm:$0xff]  ;;  %v211_v25 = vld [vmem:[%s2471_s2 + $0x5d0] sm:$0xff]  ;;  %v214_v39 = vld [vmem:[%s2471_s2 + $0x5e8] sm:$0xff] }
  0x37   :  { %1413 = vmatprep.subr.bf16.mxu0 %v1412_v55  ;;  %v154_v55 = vld [vmem:[%s2471_s2 + $0x408] sm:$0xff]  ;;  %v159_v29 = vld [vmem:[%s2471_s2 + $0x430] sm:$0xff]  ;;  %v177_v31 = vld [vmem:[%s2471_s2 + $0x4c0] sm:$0xff] }
  0x38   :  { %1375 = vmatpush3.bf16.msra.mxu1 %v1374_v58  ;;  %v406_v58 = vcombine.high %v2090_v51, %v2090_v51  ;;  %v1426_v62 = vpack.c.bf16 %v154_v55, %v153_v54  ;;  %v405_v1 = vcombine.high %v2093_v52, %v2093_v52  ;;  %v195_v35 = vld [vmem:[%s2471_s2 + $0x550] sm:$0xff]  ;;  %v213_v38 = vld [vmem:[%s2471_s2 + $0x5e0] sm:$0xff] }
  0x39   :  { %1377 = vmatprep.subr.bf16.mxu1 %v1376_v61  ;;  %v190_v61 = vld [vmem:[%s2471_s2 + $0x528] sm:$0xff]  ;;  %v161_v42 = vld [vmem:[%s2471_s2 + $0x440] sm:$0xff] }
  0x3a   :  { %1415 = vmatpush3.bf16.msra.mxu0 %v1414_v0  ;;  %v208_v0 = vld [vmem:[%s2471_s2 + $0x5b8] sm:$0xff]  ;;  %v1466_v6 = vpack.c.bf16 %v190_v61, %v189_v60 }
  0x3b   :  { %1417 = vmatprep.subr.bf16.mxu0 %v1416_v4  ;;  %v155_v4 = vld [vmem:[%s2471_s2 + $0x410] sm:$0xff]  ;;  %v1468_v9 = vpack.c.bf16 %v208_v0, %v207_v63 }
  0x3c   :  { %1379 = vmatpush3.bf16.msra.mxu1 %v1378_v7  ;;  %v173_v7 = vld [vmem:[%s2471_s2 + $0x4a0] sm:$0xff]  ;;  %v1430_v12 = vpack.c.bf16 %v156_v5, %v155_v4 }
  0x3d   :  { %1381 = vmatprep.subr.bf16.mxu1 %v1380_v10  ;;  %v191_v10 = vld [vmem:[%s2471_s2 + $0x530] sm:$0xff]  ;;  %v1432_v14 = vpack.c.bf16 %v174_v8, %v173_v7 }
  0x3e   :  { %1419 = vmatpush3.bf16.msra.mxu0 %v1418_v13  ;;  %v209_v13 = vld [vmem:[%s2471_s2 + $0x5c0] sm:$0xff]  ;;  %v1470_v18 = vpack.c.bf16 %v192_v11, %v191_v10 }
  0x3f   :  { %1421 = vmatprep.subr.bf16.mxu0 %v1420_v16  ;;  %v158_v16 = vld [vmem:[%s2471_s2 + $0x428] sm:$0xff] }
  0x40   :  { %1383 = vmatpush3.bf16.msra.mxu1 %v1382_v20  ;;  %v176_v20 = vld [vmem:[%s2471_s2 + $0x4b8] sm:$0xff]  ;;  %v1434_v24 = vpack.c.bf16 %v158_v16, %v157_v15 }
  0x41   :  { %1385 = vmatprep.subr.bf16.mxu1 %v1384_v23  ;;  %v194_v23 = vld [vmem:[%s2471_s2 + $0x548] sm:$0xff]  ;;  %v1436_v28 = vpack.c.bf16 %v176_v20, %v175_v19 }
  0x42   :  { %1423 = vmatpush3.bf16.msra.mxu0 %v1422_v27  ;;  %v212_v27 = vld [vmem:[%s2471_s2 + $0x5d8] sm:$0xff]  ;;  %v1474_v26 = vpack.c.bf16 %v194_v23, %v193_v22 }
  0x43   :  { %1457 = vmatprep.subr.bf16.mxu0 %v1456_v30  ;;  %v160_v30 = vld [vmem:[%s2471_s2 + $0x438] sm:$0xff]  ;;  %v1476_v34 = vpack.c.bf16 %v212_v27, %v211_v25 }
  0x44   :  { %1387 = vmatpush3.bf16.msra.mxu1 %v1386_v32  ;;  %v178_v32 = vld [vmem:[%s2471_s2 + $0x4c8] sm:$0xff]  ;;  %v1438_v37 = vpack.c.bf16 %v160_v30, %v159_v29 }
  0x45   :  { %717 = vmatmul.mubr.f32.vlgmr.msra.gmra.mrb[2].mxu0 %v1948_v40  ;;  %1389 = vmatprep.subr.bf16.mxu1 %v1388_v36  ;;  %v172_v40 = vld [vmem:[%s2471_s2 + $0x498] sm:$0xff] }
  0x46   :  { %1459 = vmatpush3.bf16.msra.mxu0 %v1458_v41  ;;  %856 = vmatprep.mubr.f32.mxu0 %v406_v58  ;;  %v1428_v2 = vpack.c.bf16 %v172_v40, %v171_v57  ;;  %v196_v36 = vld [vmem:[%s2471_s2 + $0x558] sm:$0xff]  ;;  %v1440_v41 = vpack.c.bf16 %v178_v32, %v177_v31 }
  0x47   :  { %1461 = vmatprep.subr.bf16.mxu0 %v1460_v45  ;;  %v1478_v44 = vpack.c.bf16 %v196_v36, %v195_v35  ;;  %v179_v45 = vld [vmem:[%s2471_s2 + $0x4d0] sm:$0xff] }
  0x48   :  { %1391 = vmatpush3.bf16.msra.mxu1 %v1390_v48 }
  0x49   :  { %1425 = vmatprep.subr.bf16.mxu1 %v1424_v53 }
  0x4a   :  { %1463 = vmatpush3.bf16.msra.mxu0 %v1462_v56 }
  0x4b   :  { %647 = vmatmul.mubr.f32.vlgmr.msra.gmra.mrb[4].mxu1 %v1933_v33  ;;  %1465 = vmatprep.subr.bf16.mxu0 %v1464_v59  ;;  %v210_v33 = vld [vmem:[%s2471_s2 + $0x5c8] sm:$0xff] }
  0x4c   :  { %1427 = vmatpush3.bf16.msra.mxu1 %v1426_v62  ;;  %786 = vmatprep.mubr.f32.mxu1 %v405_v1  ;;  %v1472_v21 = vpack.c.bf16 %v210_v33, %v209_v13 }
  0x4d   :  { %1429 = vmatprep.subr.bf16.mxu1 %v1428_v2 }
  0x4e   :  { %1467 = vmatpush3.bf16.msra.mxu0 %v1466_v6 }
  0x4f   :  { %1469 = vmatprep.subr.bf16.mxu0 %v1468_v9 }
  0x50   :  { %1431 = vmatpush3.bf16.msra.mxu1 %v1430_v12 }
  0x51   :  { %1433 = vmatprep.subr.bf16.mxu1 %v1432_v14 }
  0x52   :  { %1471 = vmatpush3.bf16.msra.mxu0 %v1470_v18 }
  0x53   :  { %1473 = vmatprep.subr.bf16.mxu0 %v1472_v21 }
  0x54   :  { %1435 = vmatpush3.bf16.msra.mxu1 %v1434_v24 }
  0x55   :  { %1437 = vmatprep.subr.bf16.mxu1 %v1436_v28 }
  0x56   :  { %1475 = vmatpush3.bf16.msra.mxu0 %v1474_v26 }
  0x57   :  { %10 = vsyncpa [#allocation3], 0  ;;  %1477 = vmatprep.subr.bf16.mxu0 %v1476_v34  ;;  %v1480_v47 = vpack.c.bf16 %v214_v39, %v213_v38  ;;  %v197_v48 = vld [vmem:[%s2471_s2 + $0x560] sm:$0xff]  ;;  %v198_v49 = vld [vmem:[%s2471_s2 + $0x568] sm:$0xff]  ;;  %v1442_v50 = vpack.c.bf16 %v162_v43, %v161_v42  ;;  %v1444_v55 = vpack.c.bf16 %v180_v46, %v179_v45  ;;  %vm439_vm2 = vcmask 523264   ;;  %s1593_s3 = smov [#allocation2]  }
  0x58   :  { %1439 = vmatpush3.bf16.msra.mxu1 %v1438_v37  ;;  %v215_v53 = vld [vmem:[%s2471_s2 + $0x5f0] sm:$0xff]  ;;  %v216_v54 = vld [vmem:[%s2471_s2 + $0x5f8] sm:$0xff]  ;;  %v1482_v58 = vpack.c.bf16 %v198_v49, %v197_v48  ;;  %v181_v59 = vld [vmem:[%s2471_s2 + $0x4e0] sm:$0xff]  ;;  %s1018_s17 = sshll.u32 %s1593_s3, 4  ;;  %vm1010_vm3 = vcmask 123904   ;;  %s1019_s17 = int_to_ptr.vmem [resolvable:$true] %s1018_s17 }
  0x59   :  { %1441 = vmatprep.subr.bf16.mxu1 %v1440_v41  ;;  %v163_v56 = vld [vmem:[%s2471_s2 + $0x450] sm:$0xff]  ;;  %v164_v57 = vld [vmem:[%s2471_s2 + $0x458] sm:$0xff]  ;;  %v182_v60 = vld [vmem:[%s2471_s2 + $0x4e8] sm:$0xff]  ;;  %v1484_v62 = vpack.c.bf16 %v216_v54, %v215_v53  ;;  %s1565_s18 = scalar_lea.vmem %s1019_s17, 32  ;;  %p1570_p1 = scmp.lt.s32.totalorder %s1019_s17, %s1019_s17 }
  0x5a   :  { %v24_v40 = vld [vmem:[%s2469_s0 + $0x18] sm:$0xff]  ;;  %1479 = vmatpush3.bf16.msra.mxu0 %v1478_v44  ;;  %v199_v63 = vld [vmem:[%s2471_s2 + $0x570] sm:$0xff]  ;;  %v1446_v1 = vpack.c.bf16 %v164_v57, %v163_v56  ;;  %v1448_v2 = vpack.c.bf16 %v182_v60, %v181_v59  ;;  %v165_v4 = vld [vmem:[%s2471_s2 + $0x460] sm:$0xff]  ;;  %p1566_p0 = scmp.ne.s32.totalorder %s1019_s17, %s1565_s18  ;;  %p1571_p2 = scmp.lt.s32.totalorder %s1565_s18, %s1565_s18 }
  0x5b   :  { %v407_v61 = vcombine.high %v24_v40, %v24_v40  ;;  %1481 = vmatprep.subr.bf16.mxu0 %v1480_v47  ;;  %v200_v0 = vld [vmem:[%s2471_s2 + $0x578] sm:$0xff]  ;;  %v166_v5 = vld [vmem:[%s2471_s2 + $0x468] sm:$0xff]  ;;  %v183_v7 = vld [vmem:[%s2471_s2 + $0x4f0] sm:$0xff]  ;;  %v2285_v23 = vrot.slane %v24_v40, %v1779_v17 }
  0x5c   :  { %1443 = vmatpush3.bf16.msra.mxu1 %v1442_v50  ;;  %v1486_v6 = vpack.c.bf16 %v200_v0, %v199_v63  ;;  %v184_v8 = vld [vmem:[%s2471_s2 + $0x4f8] sm:$0xff]  ;;  %v249_v10 = vld [vmem:[%s2471_s2 + $0x700] sm:$0xff]  ;;  %v250_v11 = vld [vmem:[%s2471_s2 + $0x708] sm:$0xff]  ;;  %v1450_v12 = vpack.c.bf16 %v166_v5, %v165_v4  ;;  %p1572_p3 = por %p1571_p2, %p1570_p1 }
  0x5d   :  { %1445 = vmatprep.subr.bf16.mxu1 %v1444_v55  ;;  %v2255_v9 = vrot.slane %v407_v61, %v1779_v17  ;;  %v1452_v13 = vpack.c.bf16 %v184_v8, %v183_v7  ;;  %v167_v33 = vld [vmem:[%s2471_s2 + $0x470] sm:$0xff]  ;;  %v168_v14 = vld [vmem:[%s2471_s2 + $0x478] sm:$0xff]  ;;  %v1521_v15 = vpack.c.bf16 %v250_v11, %v249_v10  ;;  %v233_v16 = vld [vmem:[%s2471_s2 + $0x680] sm:$0xff]  ;;  %v422_v31 = vcombine.high %v2285_v23, %v2285_v23 }
  0x5e   :  { %1483 = vmatpush3.bf16.msra.mxu0 %v1482_v58  ;;  %v234_v18 = vld [vmem:[%s2471_s2 + $0x688] sm:$0xff]  ;;  %v251_v20 = vld [vmem:[%s2471_s2 + $0x710] sm:$0xff]  ;;  %v252_v21 = vld [vmem:[%s2471_s2 + $0x718] sm:$0xff]  ;;  %v1454_v22 = vpack.c.bf16 %v168_v14, %v167_v33  ;;  %p1573_p4 = pnand %p1572_p3, %p1566_p0 }
  0x5f   :  { %1485 = vmatprep.subr.bf16.mxu0 %v1484_v62  ;;  %v423_v19 = vcombine.high %v2255_v9, %v2255_v9  ;;  %v1488_v24 = vpack.c.bf16 %v234_v18, %v233_v16  ;;  %v217_v25 = vld [vmem:[%s2471_s2 + $0x600] sm:$0xff]  ;;  %v218_v27 = vld [vmem:[%s2471_s2 + $0x608] sm:$0xff]  ;;  %v1524_v28 = vpack.c.bf16 %v252_v21, %v251_v20  ;;  %v235_v29 = vld [vmem:[%s2471_s2 + $0x690] sm:$0xff] }
  0x60   :  { %1447 = vmatpush3.bf16.msra.mxu1 %v1446_v1  ;;  %v236_v17 = vld [vmem:[%s2471_s2 + $0x698] sm:$0xff]  ;;  %v254_v30 = vld [vmem:[%s2471_s2 + $0x728] sm:$0xff]  ;;  %v1490_v26 = vpack.c.bf16 %v218_v27, %v217_v25  ;;  %v219_v34 = vld [vmem:[%s2471_s2 + $0x610] sm:$0xff] }
  0x61   :  { %1449 = vmatprep.subr.bf16.mxu1 %v1448_v2  ;;  %v1492_v32 = vpack.c.bf16 %v236_v17, %v235_v29  ;;  %v220_v35 = vld [vmem:[%s2471_s2 + $0x618] sm:$0xff]  ;;  %v237_v37 = vld [vmem:[%s2471_s2 + $0x6a0] sm:$0xff]  ;;  %v238_v38 = vld [vmem:[%s2471_s2 + $0x6a8] sm:$0xff] }
  0x62   :  { %1487 = vmatpush3.bf16.msra.mxu0 %v1486_v6  ;;  %v255_v39 = vld [vmem:[%s2471_s2 + $0x730] sm:$0xff]  ;;  %v256_v41 = vld [vmem:[%s2471_s2 + $0x738] sm:$0xff]  ;;  %v1494_v42 = vpack.c.bf16 %v220_v35, %v219_v34  ;;  %v1496_v43 = vpack.c.bf16 %v238_v38, %v237_v37  ;;  %v221_v44 = vld [vmem:[%s2471_s2 + $0x620] sm:$0xff] }
  0x63   :  { %1520 = vmatprep.subr.bf16.mxu0 %v1589_v3  ;;  %v1530_v45 = vpack.c.bf16 %v256_v41, %v255_v39  ;;  %v239_v46 = vld [vmem:[%s2471_s2 + $0x6b0] sm:$0xff]  ;;  %v240_v47 = vld [vmem:[%s2471_s2 + $0x6b8] sm:$0xff]  ;;  %v257_v48 = vld [vmem:[%s2471_s2 + $0x740] sm:$0xff] }
  0x64   :  { %1451 = vmatpush3.bf16.msra.mxu1 %v1450_v12  ;;  %v258_v49 = vld [vmem:[%s2471_s2 + $0x748] sm:$0xff]  ;;  %v1500_v53 = vpack.c.bf16 %v240_v47, %v239_v46  ;;  %v223_v54 = vld [vmem:[%s2471_s2 + $0x630] sm:$0xff]  ;;  %v224_v55 = vld [vmem:[%s2471_s2 + $0x638] sm:$0xff] }
  0x65   :  { %857 = vmatmul.mubr.f32.vlgmr.msra.gmra.mrb[4].mxu0 %v2090_v51  ;;  %1453 = vmatprep.subr.bf16.mxu1 %v1452_v13  ;;  %v253_v51 = vld [vmem:[%s2471_s2 + $0x720] sm:$0xff]  ;;  %v1533_v56 = vpack.c.bf16 %v258_v49, %v257_v48  ;;  %v242_v40 = vld [vmem:[%s2471_s2 + $0x6c8] sm:$0xff]  ;;  %v259_v58 = vld [vmem:[%s2471_s2 + $0x750] sm:$0xff]  ;;  %v1502_v60 = vpack.c.bf16 %v224_v55, %v223_v54 }
  0x66   :  { %1522 = vmatpush1.bf16.msra.mxu0 %v1521_v15  ;;  %1027 = vmatprep.mubr.msk.f32.mxu0 %vm439_vm2, %v423_v19  ;;  %v1527_v36 = vpack.c.bf16 %v254_v30, %v253_v51  ;;  %v241_v57 = vld [vmem:[%s2471_s2 + $0x6c0] sm:$0xff]  ;;  %v260_v59 = vld [vmem:[%s2471_s2 + $0x758] sm:$0xff]  ;;  %v226_v63 = vld [vmem:[%s2471_s2 + $0x648] sm:$0xff] }
  0x67   :  { %1523 = vmatprep.subr.bf16.mxu0 %v1589_v3  ;;  %v1504_v61 = vpack.c.bf16 %v242_v40, %v241_v57  ;;  %v225_v62 = vld [vmem:[%s2471_s2 + $0x640] sm:$0xff]  ;;  %v1536_v0 = vpack.c.bf16 %v260_v59, %v259_v58  ;;  %v243_v1 = vld [vmem:[%s2471_s2 + $0x6d0] sm:$0xff]  ;;  %v244_v2 = vld [vmem:[%s2471_s2 + $0x6d8] sm:$0xff] }
  0x68   :  { %1455 = vmatpush3.bf16.msra.mxu1 %v1454_v22  ;;  %v261_v4 = vld [vmem:[%s2471_s2 + $0x760] sm:$0xff]  ;;  %v262_v5 = vld [vmem:[%s2471_s2 + $0x768] sm:$0xff]  ;;  %v1506_v6 = vpack.c.bf16 %v226_v63, %v225_v62  ;;  %v1508_v7 = vpack.c.bf16 %v244_v2, %v243_v1  ;;  %v227_v8 = vld [vmem:[%s2471_s2 + $0x650] sm:$0xff] }
  0x69   :  { %1489 = vmatprep.subr.bf16.mxu1 %v1488_v24  ;;  %v228_v10 = vld [vmem:[%s2471_s2 + $0x658] sm:$0xff]  ;;  %v1539_v11 = vpack.c.bf16 %v262_v5, %v261_v4  ;;  %v245_v12 = vld [vmem:[%s2471_s2 + $0x6e0] sm:$0xff]  ;;  %v246_v13 = vld [vmem:[%s2471_s2 + $0x6e8] sm:$0xff] }
  0x6a   :  { %1525 = vmatpush1.bf16.msra.mxu0 %v1524_v28  ;;  %v263_v33 = vld [vmem:[%s2471_s2 + $0x770] sm:$0xff]  ;;  %v264_v14 = vld [vmem:[%s2471_s2 + $0x778] sm:$0xff]  ;;  %v1510_v15 = vpack.c.bf16 %v228_v10, %v227_v8  ;;  %v1512_v16 = vpack.c.bf16 %v246_v13, %v245_v12  ;;  %v229_v18 = vld [vmem:[%s2471_s2 + $0x660] sm:$0xff] }
  0x6b   :  { %787 = vmatmul.mubr.f32.vlgmr.msra.gmra.mrb[6].mxu1 %v2093_v52  ;;  %1526 = vmatprep.subr.bf16.mxu0 %v1589_v3  ;;  %v222_v52 = vld [vmem:[%s2471_s2 + $0x628] sm:$0xff]  ;;  %v1542_v20 = vpack.c.bf16 %v264_v14, %v263_v33  ;;  %v247_v21 = vld [vmem:[%s2471_s2 + $0x6f0] sm:$0xff]  ;;  %v248_v22 = vld [vmem:[%s2471_s2 + $0x6f8] sm:$0xff] }
  0x6c   :  { %1491 = vmatpush3.bf16.msra.mxu1 %v1490_v26  ;;  %926 = vmatprep.mubr.f32.mxu1 %v422_v31  ;;  %v1498_v50 = vpack.c.bf16 %v222_v52, %v221_v44  ;;  %v230_v19 = vld [vmem:[%s2471_s2 + $0x668] sm:$0xff]  ;;  %v265_v24 = vld [vmem:[%s2471_s2 + $0x780] sm:$0xff]  ;;  %v1516_v28 = vpack.c.bf16 %v248_v22, %v247_v21  ;;  %v231_v29 = vld [vmem:[%s2471_s2 + $0x670] sm:$0xff] }
  0x6d   :  { %1493 = vmatprep.subr.bf16.mxu1 %v1492_v32  ;;  %v266_v25 = vld [vmem:[%s2471_s2 + $0x788] sm:$0xff]  ;;  %v1514_v27 = vpack.c.bf16 %v230_v19, %v229_v18  ;;  %v232_v17 = vld [vmem:[%s2471_s2 + $0x678] sm:$0xff]  ;;  %v267_v30 = vld [vmem:[%s2471_s2 + $0x790] sm:$0xff] }
  0x6e   :  { %1528 = vmatpush1.bf16.msra.mxu0 %v1527_v36  ;;  %v1545_v51 = vpack.c.bf16 %v266_v25, %v265_v24  ;;  %v268_v26 = vld [vmem:[%s2471_s2 + $0x798] sm:$0xff]  ;;  %v1518_v31 = vpack.c.bf16 %v232_v17, %v231_v29  ;;  %v269_v34 = vld [vmem:[%s2471_s2 + $0x7a0] sm:$0xff]  ;;  %v270_v35 = vld [vmem:[%s2471_s2 + $0x7a8] sm:$0xff] }
  0x6f   :  { %1529 = vmatprep.subr.bf16.mxu0 %v1589_v3  ;;  %v1548_v32 = vpack.c.bf16 %v268_v26, %v267_v30  ;;  %v1551_v36 = vpack.c.bf16 %v270_v35, %v269_v34  ;;  %v271_v37 = vld [vmem:[%s2471_s2 + $0x7b0] sm:$0xff]  ;;  %v272_v38 = vld [vmem:[%s2471_s2 + $0x7b8] sm:$0xff] }
  0x70   :  { %1495 = vmatpush3.bf16.msra.mxu1 %v1494_v42  ;;  %v1554_v39 = vpack.c.bf16 %v272_v38, %v271_v37 }
  0x71   :  { %1497 = vmatprep.subr.bf16.mxu1 %v1496_v43 }
  0x72   :  { %1531 = vmatpush1.bf16.msra.mxu0 %v1530_v45 }
  0x73   :  { %1532 = vmatprep.subr.bf16.mxu0 %v1589_v3 }
  0x74   :  { %1499 = vmatpush3.bf16.msra.mxu1 %v1498_v50 }
  0x75   :  { %1501 = vmatprep.subr.bf16.mxu1 %v1500_v53 }
  0x76   :  { %1534 = vmatpush1.bf16.msra.mxu0 %v1533_v56 }
  0x77   :  { %1535 = vmatprep.subr.bf16.mxu0 %v1589_v3 }
  0x78   :  { %1503 = vmatpush3.bf16.msra.mxu1 %v1502_v60 }
  0x79   :  { %1505 = vmatprep.subr.bf16.mxu1 %v1504_v61 }
  0x7a   :  { %1537 = vmatpush1.bf16.msra.mxu0 %v1536_v0 }
  0x7b   :  { %1538 = vmatprep.subr.bf16.mxu0 %v1589_v3 }
  0x7c   :  { %1507 = vmatpush3.bf16.msra.mxu1 %v1506_v6  ;;  %v1028_v6 = vld [vmem:[%s2473_s4] ss:$0 sm:$0xff] }
  0x7d   :  { %1509 = vmatprep.subr.bf16.mxu1 %v1508_v7 }
  0x7e   :  { %1540 = vmatpush1.bf16.msra.mxu0 %v1539_v11 }
  0x7f   :  { %1541 = vmatprep.subr.bf16.mxu0 %v1589_v3 }
  0x80   :  { %1511 = vmatpush3.bf16.msra.mxu1 %v1510_v15 }
  0x81   :  { %1513 = vmatprep.subr.bf16.mxu1 %v1512_v16 }
  0x82   :  { %1543 = vmatpush1.bf16.msra.mxu0 %v1542_v20 }
  0x83   :  { %1544 = vmatprep.subr.bf16.mxu0 %v1589_v3 }
  0x84   :  { %1515 = vmatpush3.bf16.msra.mxu1 %v1514_v27 }
  0x85   :  { %1517 = vmatprep.subr.bf16.mxu1 %v1516_v28 }
  0x86   :  { %1546 = vmatpush1.bf16.msra.mxu0 %v1545_v51 }
  0x87   :  { %1547 = vmatprep.subr.bf16.mxu0 %v1589_v3 }
  0x88   :  { %1519 = vmatpush3.bf16.msra.mxu1 %v1518_v31 }
  0x8a   :  { %1549 = vmatpush1.bf16.msra.mxu0 %v1548_v32 }
  0x8b   :  { %927 = vmatmul.mubr.f32.vlgmr.msra.gmra.mrb[8].mxu1 %v2285_v23  ;;  %1550 = vmatprep.subr.bf16.mxu0 %v1589_v3 }
  0x8e   :  { %1552 = vmatpush1.bf16.msra.mxu0 %v1551_v36 }
  0x8f   :  { %1553 = vmatprep.subr.bf16.mxu0 %v1589_v3 }
  0x92   :  { %1555 = vmatpush1.bf16.msra.mxu0 %v1554_v39 }
  0x95   :  { %997 = vmatmul.mubr.f32.vlgmr.msra.gmra.mrb[6].mxu0 %v2255_v9 }
  0xde   :  { %v348_v41 = vpop.f32.mrb[0].mxu1 }
  0xdf   :  { %v1289_v42 = vpop.f32.mrb[1].mxu1 }
  0xf8   :  { %v1101_v23 = vpop.f32.mrb[0].mxu0 }
  0xf9   :  { %v1102_v43 = vpop.f32.mrb[1].mxu0 }
  0xfa   :  { %v1103_v44 = vadd.f32 %v1102_v43, %v1101_v23 }
  0xfe   :  { %v1066_v52 = vpop.f32.mrb[2].mxu1 }
  0xff   :  { %v1067_v45 = vpop.f32.mrb[3].mxu1 }
 0x100   :  { %v1068_v46 = vadd.f32 %v1067_v45, %v1066_v52 }
 0x102   :  { %v509_v47 = vadd.f32 %v1068_v46, %v348_v41 }
 0x104   :  { %v579_v48 = vadd.f32 %v1103_v44, %v509_v47 }
 0x118   :  { %v1171_v49 = vpop.f32.mrb[2].mxu0 }
 0x119   :  { %v1172_v50 = vpop.f32.mrb[3].mxu0 }
 0x11a   :  { %v1173_v53 = vadd.f32 %v1172_v50, %v1171_v49 }
 0x11e   :  { %v1136_v54 = vpop.f32.mrb[4].mxu1 }
 0x11f   :  { %v1137_v55 = vpop.f32.mrb[5].mxu1 }
 0x120   :  { %v1138_v56 = vadd.f32 %v1137_v55, %v1136_v54 }
 0x122   :  { %v649_v3 = vadd.f32 %v1138_v56, %v579_v48 }
 0x124   :  { %v719_v57 = vadd.f32 %v1173_v53, %v649_v3 }
 0x138   :  { %v1241_v40 = vpop.f32.mrb[4].mxu0 }
 0x139   :  { %v1242_v9 = vpop.f32.mrb[5].mxu0 }
 0x13a   :  { %v1243_v58 = vadd.f32 %v1242_v9, %v1241_v40 }
 0x13e   :  { %v1206_v59 = vpop.f32.mrb[6].mxu1 }
 0x13f   :  { %v1207_v60 = vpop.f32.mrb[7].mxu1 }
 0x140   :  { %v1208_v61 = vadd.f32 %v1207_v60, %v1206_v59 }
 0x142   :  { %v789_v62 = vadd.f32 %v1208_v61, %v719_v57 }
 0x144   :  { %v859_v63 = vadd.f32 %v1243_v58, %v789_v62 }
 0x15e   :  { %v1276_v0 = vpop.f32.mrb[8].mxu1 }
 0x15f   :  { %v1277_v1 = vpop.f32.mrb[9].mxu1 }
 0x160   :  { %v1278_v2 = vadd.f32 %v1277_v1, %v1276_v0 }
 0x162   :  { %v929_v4 = vadd.f32 %v1278_v2, %v859_v63 }
 0x168   :  { %v998_v5 = vpop.f32.mrb[6].mxu0 }
 0x169   :  { %v999_v7 = vadd.f32 %v998_v5, %v929_v4  ;;  %v1000_v8 = vpop.f32.mrb[7].mxu0 }
 0x16b   :  { %v1009_v10 = vadd.f32 %v1028_v6, %v999_v7 }
 0x16d   :  { %1011 = vst.msk [vmem:[#allocation2] sm:$0x3] %vm1010_vm3, %v1009_v10 }
 0x16e   :  { %1576 = shalt.err (!%p1573_p4)
}
 0x16f   :  { %s1577_s21 = scalar_lea.hbm %s2474_s5, 32 }
 0x170   :  { %p1578_p5 = scmp.ne.s32.totalorder %s2474_s5, %s1577_s21  ;;  %p1581_p6 = scmp.lt.u32.totalorder %s1577_s21, %s2474_s5 }
 0x172   :  { %p1583_p7 = pnand %p1581_p6, %p1578_p5 }
 0x174   :  { %1586 = shalt.err (!%p1583_p7)
}
 0x175   :  { %1021 = dma.vmem_to_hbm [thread:$0]  %s1019_s17, 32, %s2474_s5, [#allocation3]  }
 0x176   :  { %1587 = dma.done.wait [#allocation3], 32  }
 0x177   :  { %1588 = vsyncadd [#allocation3], 4294967264 }
 0x178   :  { %1025 = vsyncpa [#allocation3], 1 }

</bundles_post_ra>
